<compile_context>
chip_gen: v5e
topology: v5e:2x2
jax: 0.10.0
libtpu: 0.0.40
codegen_flags: <defaults>
</compile_context>

<pallas_src>
import math

import jax
import jax.numpy as jnp
from jax.experimental import pallas as pl
from jax.experimental.pallas import tpu as pltpu


# ----------------------------------------------------------------------------- utils
def _vmem_capacity_bytes():
    """Per-TensorCore VMEM capacity; conservative (v7x-sized) fallback."""
    try:
        cap = int(pltpu.get_tpu_info().vmem_capacity_bytes)
        if cap > 0:
            return cap
    except Exception:
        pass
    return 64 << 20


def _block_spec(shape, index_map, *, buffers=None):
    """BlockSpec with optional pipeline depth; degrades gracefully on older jax."""
    if buffers is not None:
        try:
            return pl.BlockSpec(shape, index_map, pipeline_mode=pl.Buffered(buffers))
        except (TypeError, AttributeError):
            pass
    return pl.BlockSpec(shape, index_map)


def _pick_proj_tile(total_lanes, hidden, batch_pad, vmem_bytes, wp_buffers):
    """Largest multiple of 128 dividing `total_lanes` that fits the remaining VMEM."""
    budget = int(vmem_bytes) * 3 // 4                 # headroom for compiler scratch
    budget -= 2 * batch_pad * hidden * 2              # resident silu(temb) input (bf16)
    per_lane = (wp_buffers * hidden * 2               # wp slabs        (bf16)
                + wp_buffers * 4                      # bp slabs        (f32)
                + 2 * batch_pad * 2)                  # proj out tiles  (bf16, 2 bufs)
    budget_lanes = max(128, budget // per_lane // 128 * 128)
    cap_lanes = 4096 if vmem_bytes >= (96 << 20) else 2048   # 128-MiB chips vs v7x
    cap = min(budget_lanes, cap_lanes, total_lanes)
    best = None
    tn = 128
    while tn <= cap:
        if total_lanes % tn == 0:
            best = tn
        tn += 128
    return best if best is not None else total_lanes  # toy sizes: single full tile


def _temb_vmem_limit(batch_pad, half, hidden, vmem_cap):
    f32, bf16 = 4, 2
    est = (batch_pad * f32 + half * f32                 # t, freqs
           + 2 * half * hidden * bf16                   # w1 cos/sin halves
           + hidden * hidden * bf16                     # w2 (single-buffered)
           + 2 * hidden * f32                           # b1, b2
           + batch_pad * hidden * (f32 + bf16))         # temb + silu(temb) outputs
    limit = est * 2 + (8 << 20)
    return min(max(limit, 32 << 20), int(vmem_cap))


def _proj_vmem_limit(batch_pad, hidden, tn, wp_buffers, vmem_cap):
    est = (2 * batch_pad * hidden * 2                   # resident a (bf16)
           + wp_buffers * (hidden * tn * 2 + tn * 4)    # wp + bp slabs
           + 2 * batch_pad * tn * 2)                    # proj output tiles
    limit = est * 3 // 2 + (8 << 20)
    return min(max(limit, 32 << 20), int(vmem_cap))


# --------------------------------------------------------------------------- kernels
def temb_kernel(t_ref, freqs_ref, w1c_ref, w1s_ref, b1_ref, w2_ref, b2_ref,
                temb_ref, a_ref):
    # Sinusoidal embedding; flip_sin_to_cos=True => [cos | sin] halves.  The lane
    # concat is avoided by splitting W1 along its input axis into two small dots.
    arg = t_ref[...] * freqs_ref[...]                        # (Bp, half) f32
    cos_e = jnp.cos(arg).astype(jnp.bfloat16)
    sin_e = jnp.sin(arg).astype(jnp.bfloat16)
    h = (jnp.dot(cos_e, w1c_ref[...], preferred_element_type=jnp.float32)
         + jnp.dot(sin_e, w1s_ref[...], preferred_element_type=jnp.float32)
         + b1_ref[...])
    h = h * jax.nn.sigmoid(h)                                # SiLU in f32
    temb = jnp.dot(h.astype(jnp.bfloat16), w2_ref[...],
                   preferred_element_type=jnp.float32) + b2_ref[...]
    temb_ref[...] = temb
    # act_fn(temb).to(bf16): the projection input, computed exactly once.
    a_ref[...] = (temb * jax.nn.sigmoid(temb)).astype(jnp.bfloat16)


def proj_kernel(a_ref, wp_ref, bp_ref, proj_ref):
    # One lane-dense (Bp, TN) slab of the 6H projection per grid step (bias in f32).
    p = jnp.dot(a_ref[...], wp_ref[...], preferred_element_type=jnp.float32)
    proj_ref[...] = (p + bp_ref[...]).astype(jnp.bfloat16)


# --------------------------------------------------------------------------- wrapper
def prepare_params(params, *, hidden_size, freq_dim=256):
    """One-time cast/split/reshape of raw parameters into kernel-ready form.

    Doing the f32->bf16 casts here (not per forward call) keeps the re-read /
    re-write of the big weights off the hot path.
    """
    H, F = hidden_size, freq_dim
    half = F // 2
    w1 = jnp.asarray(params["w1"], jnp.bfloat16)
    # downscale_freq_shift = 0  =>  divide by `half` exactly.
    freqs = jnp.exp(
        -math.log(10000.0) * jnp.arange(half, dtype=jnp.float32) / float(half))
    # TODO(synk): optional fp8 (v7x) / int8 (v6e) quantization of `wp` would halve
    # the dominant weight stream; needs a scale scheme + accuracy validation.
    return {
        "freqs": freqs.reshape(1, half),
        "w1c": w1[:half],                                     # rows hit by cos(arg)
        "w1s": w1[half:],                                     # rows hit by sin(arg)
        "b1": jnp.asarray(params["b1"], jnp.float32).reshape(1, H),
        "w2": jnp.asarray(params["w2"], jnp.bfloat16),
        "b2": jnp.asarray(params["b2"], jnp.float32).reshape(1, H),
        "wp": jnp.asarray(params["wp"], jnp.bfloat16),
        "bp": jnp.asarray(params["bp"], jnp.float32).reshape(1, 6 * H),
    }


def timestep_embedder(timestep, prep, *, hidden_size, freq_dim=256, tile_lanes=None):
    B = timestep.shape[0]
    H = hidden_size
    half = freq_dim // 2
    out_lanes = 6 * H

    # Pad the batch to a multiple of 16 rows so bf16 activation vregs are fully
    # packed and the projection output stores are unmasked.
    Bp = max(16, ((B + 15) // 16) * 16)
    t2d = jnp.zeros((Bp, 1), jnp.float32).at[:B, 0].set(timestep.astype(jnp.float32))

    vmem_cap = _vmem_capacity_bytes()

    # ---- Call A: sinusoid + 2-layer MLP -> temb (f32), a = silu(temb) (bf16) ----
    # grid=() => no pipelining, every operand single-buffered (w2 held once).
    temb_p, a = pl.pallas_call(
        temb_kernel,
        out_shape=(jax.ShapeDtypeStruct((Bp, H), jnp.float32),
                   jax.ShapeDtypeStruct((Bp, H), jnp.bfloat16)),
        compiler_params=pltpu.CompilerParams(
            vmem_limit_bytes=_temb_vmem_limit(Bp, half, H, vmem_cap)),
    )(t2d, prep["freqs"], prep["w1c"], prep["w1s"], prep["b1"],
      prep["w2"], prep["b2"])

    # ---- Call B: stream the (H, 6H) bf16 projection weight in lane-dense slabs ----
    wp_bufs = 3
    TN = (tile_lanes if tile_lanes is not None
          else _pick_proj_tile(out_lanes, H, Bp, vmem_cap, wp_bufs))
    assert out_lanes % TN == 0, "projection tile must divide 6*hidden_size"
    num_tiles = out_lanes // TN
    wp_bufs = min(wp_bufs, max(2, num_tiles))

    proj_p = pl.pallas_call(
        proj_kernel,
        out_shape=jax.ShapeDtypeStruct((Bp, out_lanes), jnp.bfloat16),
        grid=(num_tiles,),
        in_specs=[
            _block_spec((Bp, H), lambda j: (0, 0)),                   # a: tiny resident
            _block_spec((H, TN), lambda j: (0, j), buffers=wp_bufs),  # wp: streamed
            _block_spec((1, TN), lambda j: (0, j), buffers=wp_bufs),  # bp: streamed f32
        ],
        out_specs=pl.BlockSpec((Bp, TN), lambda j: (0, j)),           # lane-dense slabs
        compiler_params=pltpu.CompilerParams(
            # No cross-step state -> safe to shard across v7x's two TensorCores.
            dimension_semantics=("parallel",),
            vmem_limit_bytes=_proj_vmem_limit(Bp, H, TN, wp_bufs, vmem_cap)),
    )(a, prep["wp"], prep["bp"])

    return temb_p[:B], proj_p[:B]


# ----------------------------------------------------------------------------- demo
def init_params(key, hidden_size, freq_dim=256):
    """Raw (torch-like, f32) parameters; weight layout [in_features, out_features]."""
    H, F = hidden_size, freq_dim
    k1, k2, k3 = jax.random.split(key, 3)
    return {
        "w1": jax.random.normal(k1, (F, H), jnp.float32) * (1.0 / math.sqrt(F)),
        "b1": jnp.zeros((H,), jnp.float32),
        "w2": jax.random.normal(k2, (H, H), jnp.float32) * (1.0 / math.sqrt(H)),
        "b2": jnp.zeros((H,), jnp.float32),
        "wp": jax.random.normal(k3, (H, 6 * H), jnp.float32) * (1.0 / math.sqrt(H)),
        "bp": jnp.zeros((6 * H,), jnp.float32),
    }


def _reference(timestep, params, hidden_size, freq_dim):
    """Pure-JAX reference (bf16-rounded weights, f32 accumulation)."""
    half = freq_dim // 2
    fr = jnp.exp(-math.log(10000.0) * jnp.arange(half, dtype=jnp.float32) / half)
    arg = timestep.astype(jnp.float32)[:, None] * fr[None, :]
    emb = jnp.concatenate([jnp.cos(arg), jnp.sin(arg)], axis=-1)
    w1 = params["w1"].astype(jnp.bfloat16).astype(jnp.float32)
    w2 = params["w2"].astype(jnp.bfloat16).astype(jnp.float32)
    wp = params["wp"].astype(jnp.bfloat16).astype(jnp.float32)
    h = emb @ w1 + params["b1"][None, :]
    h = h * jax.nn.sigmoid(h)
    temb = h @ w2 + params["b2"][None, :]
    a = (temb * jax.nn.sigmoid(temb)).astype(jnp.bfloat16).astype(jnp.float32)
    proj = a @ wp + params["bp"].astype(jnp.float32)[None, :]
    return temb, proj


if __name__ == "__main__":
    HIDDEN = 256   # 6H = 1536 -> multiple-of-128 tiles
    FREQ = 256
    B = 8

    key = jax.random.PRNGKey(0)
    kparam, kt = jax.random.split(key)
    params = init_params(kparam, HIDDEN, FREQ)
    prep = prepare_params(params, hidden_size=HIDDEN, freq_dim=FREQ)  # one-time casts

    # A batch of scalar diffusion timesteps.
    timestep = jax.random.uniform(kt, (B,), jnp.float32, 0.0, 1000.0)

    # tile_lanes=512 -> grid=(3,) so the streamed / parallel-axis path is exercised
    # even at demo sizes; production calls omit it and get the per-generation heuristic.
    temb, proj = timestep_embedder(
        timestep, prep, hidden_size=HIDDEN, freq_dim=FREQ, tile_lanes=512
    )
    jax.block_until_ready((temb, proj))

    assert temb.shape == (B, HIDDEN) and temb.dtype == jnp.float32
    assert proj.shape == (B, 6 * HIDDEN) and proj.dtype == jnp.bfloat16

    temb_ref, proj_ref = _reference(timestep, params, HIDDEN, FREQ)
    assert jnp.allclose(temb, temb_ref, atol=1e-1, rtol=1e-1)
    assert jnp.allclose(proj.astype(jnp.float32), proj_ref, atol=1e-1, rtol=1e-1)

    print("KERNEL_OK")
</pallas_src>

<mosaic_0001>
module attributes {stable_mosaic.version = 11 : i64} {
  func.func @temb_kernel(%arg0: memref<16x1xf32, #tpu.memory_space<vmem>>, %arg1: memref<1x128xf32, #tpu.memory_space<vmem>>, %arg2: memref<128x256xbf16, #tpu.memory_space<vmem>>, %arg3: memref<128x256xbf16, #tpu.memory_space<vmem>>, %arg4: memref<1x256xf32, #tpu.memory_space<vmem>>, %arg5: memref<256x256xbf16, #tpu.memory_space<vmem>>, %arg6: memref<1x256xf32, #tpu.memory_space<vmem>>, %arg7: memref<16x256xf32, #tpu.memory_space<vmem>>, %arg8: memref<16x256xbf16, #tpu.memory_space<vmem>>) attributes {dimension_semantics = [], scalar_prefetch = 0 : i64, scratch_operands = 0 : i64, tpu.core_type = #tpu.core_type<tc>} {
    %c0 = arith.constant 0 : index
    %c0_0 = arith.constant 0 : index
    %0 = vector.load %arg0[%c0, %c0_0] : memref<16x1xf32, #tpu.memory_space<vmem>>, vector<16x1xf32>
    %c0_1 = arith.constant 0 : index
    %c0_2 = arith.constant 0 : index
    %1 = vector.load %arg1[%c0_1, %c0_2] : memref<1x128xf32, #tpu.memory_space<vmem>>, vector<1x128xf32>
    %2 = vector.broadcast %0 : vector<16x1xf32> to vector<16x128xf32>
    %3 = vector.broadcast %1 : vector<1x128xf32> to vector<16x128xf32>
    %4 = arith.mulf %2, %3 : vector<16x128xf32>
    %5 = math.cos %4 : vector<16x128xf32>
    %6 = arith.truncf %5 : vector<16x128xf32> to vector<16x128xbf16>
    %7 = math.sin %4 : vector<16x128xf32>
    %8 = arith.truncf %7 : vector<16x128xf32> to vector<16x128xbf16>
    %c0_3 = arith.constant 0 : index
    %c0_4 = arith.constant 0 : index
    %9 = vector.load %arg2[%c0_3, %c0_4] : memref<128x256xbf16, #tpu.memory_space<vmem>>, vector<128x256xbf16>
    %cst = arith.constant dense<0.000000e+00> : vector<16x256xf32>
    %10 = tpu.matmul %6, %9, %cst {dimension_numbers = #tpu.dot_dimension_numbers<[1], [0], [0], [1], [0, 0, 1, 1], [], []>} : vector<16x128xbf16>, vector<128x256xbf16>, vector<16x256xf32> -> vector<16x256xf32>
    %c0_5 = arith.constant 0 : index
    %c0_6 = arith.constant 0 : index
    %11 = vector.load %arg3[%c0_5, %c0_6] : memref<128x256xbf16, #tpu.memory_space<vmem>>, vector<128x256xbf16>
    %cst_7 = arith.constant dense<0.000000e+00> : vector<16x256xf32>
    %12 = tpu.matmul %8, %11, %cst_7 {dimension_numbers = #tpu.dot_dimension_numbers<[1], [0], [0], [1], [0, 0, 1, 1], [], []>} : vector<16x128xbf16>, vector<128x256xbf16>, vector<16x256xf32> -> vector<16x256xf32>
    %13 = arith.addf %10, %12 : vector<16x256xf32>
    %c0_8 = arith.constant 0 : index
    %c0_9 = arith.constant 0 : index
    %14 = vector.load %arg4[%c0_8, %c0_9] : memref<1x256xf32, #tpu.memory_space<vmem>>, vector<1x256xf32>
    %15 = vector.broadcast %14 : vector<1x256xf32> to vector<16x256xf32>
    %16 = arith.addf %13, %15 : vector<16x256xf32>
    %17 = arith.negf %16 : vector<16x256xf32>
    %18 = math.exp %17 : vector<16x256xf32>
    %cst_10 = arith.constant 1.000000e+00 : f32
    %19 = vector.broadcast %cst_10 : f32 to vector<16x256xf32>
    %20 = arith.addf %19, %18 : vector<16x256xf32>
    %21 = arith.divf %19, %20 : vector<16x256xf32>
    %22 = arith.mulf %16, %21 : vector<16x256xf32>
    %23 = arith.truncf %22 : vector<16x256xf32> to vector<16x256xbf16>
    %c0_11 = arith.constant 0 : index
    %c0_12 = arith.constant 0 : index
    %24 = vector.load %arg5[%c0_11, %c0_12] : memref<256x256xbf16, #tpu.memory_space<vmem>>, vector<256x256xbf16>
    %cst_13 = arith.constant dense<0.000000e+00> : vector<16x256xf32>
    %25 = tpu.matmul %23, %24, %cst_13 {dimension_numbers = #tpu.dot_dimension_numbers<[1], [0], [0], [1], [0, 0, 1, 1], [], []>} : vector<16x256xbf16>, vector<256x256xbf16>, vector<16x256xf32> -> vector<16x256xf32>
    %c0_14 = arith.constant 0 : index
    %c0_15 = arith.constant 0 : index
    %26 = vector.load %arg6[%c0_14, %c0_15] : memref<1x256xf32, #tpu.memory_space<vmem>>, vector<1x256xf32>
    %27 = vector.broadcast %26 : vector<1x256xf32> to vector<16x256xf32>
    %28 = arith.addf %25, %27 : vector<16x256xf32>
    %c0_16 = arith.constant 0 : index
    %c0_17 = arith.constant 0 : index
    %29 = vector.load %arg7[%c0_16, %c0_17] : memref<16x256xf32, #tpu.memory_space<vmem>>, vector<16x256xf32>
    tpu.vector_store %arg7[%c0_16, %c0_17], %28 {strides = array<i32>} : memref<16x256xf32, #tpu.memory_space<vmem>>, vector<16x256xf32>,
    %30 = arith.negf %28 : vector<16x256xf32>
    %31 = math.exp %30 : vector<16x256xf32>
    %cst_18 = arith.constant 1.000000e+00 : f32
    %32 = vector.broadcast %cst_18 : f32 to vector<16x256xf32>
    %33 = arith.addf %32, %31 : vector<16x256xf32>
    %34 = arith.divf %32, %33 : vector<16x256xf32>
    %35 = arith.mulf %28, %34 : vector<16x256xf32>
    %36 = arith.truncf %35 : vector<16x256xf32> to vector<16x256xbf16>
    %c0_19 = arith.constant 0 : index
    %c0_20 = arith.constant 0 : index
    %37 = vector.load %arg8[%c0_19, %c0_20] : memref<16x256xbf16, #tpu.memory_space<vmem>>, vector<16x256xbf16>
    tpu.vector_store %arg8[%c0_19, %c0_20], %36 {strides = array<i32>} : memref<16x256xbf16, #tpu.memory_space<vmem>>, vector<16x256xbf16>,
    return
  }
}

</mosaic_0001>

<bundles_post_ra>
// kernel: tpu_custom_call.1
= control target key start
LH: loop header
LB: loop body
LE: loop exit
PB: predicated region body
PF: predicated region fallthrough
CT: control target
= control target key end

     0   :  { %14 = vsyncpa [#allocation3], 0  ;;  %s2415_s0 = inlined_call_operand.vmem [shape: f32[16,1], index: 0, kind: input, shape index: {}]   ;;  %s2416_s1 = inlined_call_operand.vmem [shape: f32[1,128], index: 1, kind: input, shape index: {}]   ;;  %s2417_s2 = inlined_call_operand.hbm [shape: bf16[128,256], index: 2, kind: input, shape index: {}]   ;;  %s2418_s3 = inlined_call_operand.hbm [shape: bf16[128,256], index: 3, kind: input, shape index: {}]   ;;  %s2419_s4 = inlined_call_operand.vmem [shape: f32[1,256], index: 4, kind: input, shape index: {}]   ;;  %s2420_s5 = inlined_call_operand.hbm [shape: bf16[256,256], index: 5, kind: input, shape index: {}]   ;;  %s2421_s6 = inlined_call_operand.vmem [shape: f32[1,256], index: 6, kind: input, shape index: {}]   ;;  %s2422_s7 = inlined_call_operand.hbm [shape: f32[16,256], index: 7, kind: output, shape index: {0}]   ;;  %s2423_s8 = inlined_call_operand.hbm [shape: bf16[16,256], index: 8, kind: output, shape index: {1}]  }
   0x1   :  { %15 = vsyncpa [#allocation6], 0 }
   0x2   :  { %16 = vsyncpa [#allocation4], 0 }
   0x3   :  { %17 = vsyncpa [#allocation10], 0  ;;  %s39_s29 = sshll.u32 %s2418_s3, 4  ;;  %s1953_s30 = smov [#allocation5]   ;;  %s40_s29 = int_to_ptr.hbm [resolvable:$true] %s39_s29 }
   0x4   :  { %s41_s9 = sshll.u32 %s1953_s30, 4  ;;  %s26_s12 = sshll.u32 %s2417_s2, 4  ;;  %s42_s9 = int_to_ptr.vmem [resolvable:$true] %s41_s9  ;;  %s27_s12 = int_to_ptr.hbm [resolvable:$true] %s26_s12 }
   0x5   :  { %s1954_s13 = smov 128   ;;  %s1955_s14 = smov 8  }
   0x6   :  { %47 = dma.hbm_to_vmem [thread:$0]  %s40_s29, 2048, %s42_s9, [#allocation6], %s1954_s13, %s1954_s13, %s1955_s14  }
   0x7   :  { %s1956_s15 = smov [#allocation2]   ;;  %s54_s3 = sshll.u32 %s2420_s5, 4  ;;  %s55_s3 = int_to_ptr.hbm [resolvable:$true] %s54_s3 }
   0x8   :  { %s28_s16 = sshll.u32 %s1956_s15, 4  ;;  %s1957_s2 = smov [#allocation7]   ;;  %s29_s16 = int_to_ptr.vmem [resolvable:$true] %s28_s16 }
   0x9   :  { %34 = dma.hbm_to_vmem [thread:$0]  %s27_s12, 2048, %s29_s16, [#allocation3], %s1954_s13, %s1954_s13, %s1955_s14  }
   0xa   :  { %s56_s19 = sshll.u32 %s1957_s2, 4  ;;  %s57_s19 = int_to_ptr.vmem [resolvable:$true] %s56_s19 }
   0xb   :  { %62 = dma.hbm_to_vmem [thread:$0]  %s55_s3, 4096, %s57_s19, [#allocation6], %s1954_s13, %s1954_s13, %s1955_s14  }
   0xc   :  { %1945 = dma.done.wait [#allocation3], 2048  }
   0xd   :  { %1946 = vsyncadd [#allocation3], 4294965248 }
   0xe   :  { %1947 = dma.done.wait [#allocation6], 6144  }
   0xf   :  { %1948 = vsyncadd [#allocation6], 4294961152  ;;  %v1958_v0 = vmov 0   ;;  %v77_v1 = vld [vmem:[%s2415_s0] sm:$0xff]  ;;  %v78_v2 = vld [vmem:[%s2415_s0 + $0x8] sm:$0xff]  ;;  %s1403_s29 = sshll.u32 %s2422_s7, 4  ;;  %s1404_s29 = int_to_ptr.hbm [resolvable:$true] %s1403_s29 }
  0x10   :  { %1791 = vset.pattern.permute.xlu0 %v1958_v0  ;;  %v1792_v3 = vld [vmem:[%s2416_s1] ss:$0 sm:$0xff]  ;;  %v1959_v22 = vmov 683565275   ;;  %v1960_v24 = vmov 2475754826  }
  0x11   :  { %82 = vperm.xlu0 %1791, %v77_v1   ;;  %v1961_v26 = vmov 2131351028   ;;  %v1962_v31 = vmov 2102212464   ;;  %v1505_v34 = vld [vmem:[#allocation5 + $0x70] sm:$0xf] }
  0x12   :  { %v1742_v35 = vld [vmem:[#allocation5 + $0x74] sm:$0xf0]  ;;  %v1963_v36 = vmov 920167782   ;;  %v1964_v39 = vmov 1326507024  }
  0x13   :  { %v1506_v47 = vor.u32 %v1742_v35, %v1505_v34  ;;  %v1741_v58 = vld [vmem:[#allocation5 + $0x74] sm:$0xf]  ;;  %v1507_v59 = vld [vmem:[#allocation5 + $0x78] sm:$0xf0]  ;;  %v1569_v63 = vld [vmem:[#allocation2 + $0x70] sm:$0xf] }
  0x14   :  { %v1726_v1 = vld [vmem:[#allocation2 + $0x74] sm:$0xf0]  ;;  %s1966_s30 = smov 256   ;;  %s1967_s9 = smov 16  }
  0x15   :  { %827 = vmatpush.bf16.msra.mxu0 %v1506_v47  ;;  %s1968_s7 = smov [#allocation9]   ;;  %s1416_s15 = sshll.u32 %s2423_s8, 4  ;;  %s1417_s15 = int_to_ptr.hbm [resolvable:$true] %s1416_s15 }
  0x16   :  { %s1414_s10 = sshll.u32 %s1968_s7, 4  ;;  %s1415_s10 = int_to_ptr.vmem [resolvable:$true] %s1414_s10 }
  0x19   :  { %87 = vperm.xlu0 %1791, %v78_v2   ;;  %v1725_v2 = vld [vmem:[#allocation2 + $0x74] sm:$0xf] }
  0x83   :  { %v83_v4 = vpop.permute.xlu0 %82 }
  0x84   :  { %v2042_v5 = vmul.f32 %v1792_v3, %v83_v4 }
  0x86   :  { %v98_v6 = vand.u32 2139095040, %v2042_v5  ;;  %v95_v8 = vand.u32 2147483647, %v2042_v5 }
  0x88   :  { %v99_v7 = vshrl.u32 %v98_v6, 23  ;;  %v102_v13 = vand.u32 8388607, %v95_v8 }
  0x8a   :  { %v1435_v9 = vadd.s32 4294967169, %v99_v7  ;;  %v103_v19 = vor.u32 8388608, %v102_v13 }
  0x8b   :  { %v88_v10 = vpop.permute.xlu0 %87 }
  0x8c   :  { %v105_v11 = vadd.s32 1, %v1435_v9  ;;  %v2046_v12 = vmul.f32 %v1792_v3, %v88_v10  ;;  %v2083_v61 = vshll.u32 %v103_v19, 8  ;;  %v1571_v3 = vld [vmem:[#allocation2 + $0x78] sm:$0xf0]  ;;  %v1510_v9 = vor.u32 %v1741_v58, %v1507_v59  ;;  %v1497_v10 = vld [vmem:[#allocation5 + $0x60] sm:$0xf] }
  0x8e   :  { %vm106_vm0 = vcmp.gt.s32.totalorder %v105_v11, 0  ;;  %v2424_v15 = vand.u32 2147483647, %v2046_v12  ;;  %v252_v16 = vand.u32 2139095040, %v2046_v12  ;;  %v2097_v19 = vand.u32 65535, %v2083_v61  ;;  %841 = vmatpush.bf16.msra.mxu1 %v1510_v9 }
  0x8f   :  { %v107_v14 = vsel %vm106_vm0, %v105_v11, 0  ;;  %v1740_v11 = vld [vmem:[#allocation5 + $0x64] sm:$0xf0] }
  0x90   :  { %v109_v17 = vand.u32 31, %v107_v14  ;;  %v2052_v18 = vshrl.u32 %v107_v14, 5  ;;  %v253_v21 = vshrl.u32 %v252_v16, 23  ;;  %v256_v28 = vand.u32 8388607, %v2424_v15 }
  0x91   :  { %v1739_v16 = vld [vmem:[#allocation5 + $0x64] sm:$0xf]  ;;  %v1523_v15 = vld [vmem:[#allocation2 + $0x18] sm:$0xf0] }
  0x92   :  { %v110_v20 = vsub.s32 32, %v109_v17  ;;  %v112_v23 = vshll.u32 %v1959_v22, %v109_v17  ;;  %v115_v25 = vshll.u32 %v1960_v24, %v109_v17  ;;  %v118_v27 = vshll.u32 %v1961_v26, %v109_v17 }
  0x93   :  { %v121_v33 = vshll.u32 %v1962_v31, %v109_v17  ;;  %v124_v38 = vshll.u32 %v1963_v36, %v109_v17  ;;  %vm127_vm1 = vcmp.lt.s32.totalorder %v2052_v18, 1  ;;  %v1438_v44 = vadd.s32 4294967169, %v253_v21  ;;  %v1499_v17 = vld [vmem:[#allocation5 + $0x68] sm:$0xf0] }
  0x94   :  { %v113_v29 = vshrl.u32 %v1960_v24, %v110_v20  ;;  %v116_v30 = vshrl.u32 %v1961_v26, %v110_v20  ;;  %v119_v32 = vshrl.u32 %v1962_v31, %v110_v20  ;;  %v122_v37 = vshrl.u32 %v1963_v36, %v110_v20 }
  0x95   :  { %v125_v40 = vshrl.u32 %v1964_v39, %v110_v20  ;;  %vm128_vm2 = vcmp.lt.s32.totalorder %v2052_v18, 2  ;;  %v111_v48 = vshrl.u32 %v1959_v22, %v110_v20  ;;  %vm129_vm3 = vcmp.lt.s32.totalorder %v2052_v18, 3 }
  0x96   :  { %v114_v41 = vor.u32 %v113_v29, %v112_v23  ;;  %v117_v42 = vor.u32 %v116_v30, %v115_v25  ;;  %v120_v43 = vor.u32 %v119_v32, %v118_v27  ;;  %v123_v45 = vor.u32 %v122_v37, %v121_v33 }
  0x97   :  { %v126_v46 = vor.u32 %v125_v40, %v124_v38  ;;  %vm130_vm4 = vcmp.lt.s32.totalorder %v2052_v18, 4  ;;  %v257_v52 = vor.u32 8388608, %v256_v28  ;;  %v259_v53 = vadd.s32 1, %v1438_v44 }
  0x98   :  { %v139_v49 = vsel %vm127_vm1, %v117_v42, %v120_v43  ;;  %v136_v50 = vsel %vm130_vm4, %v123_v45, 920167782  ;;  %v132_v54 = vsel %vm130_vm4, %v120_v43, 2102212464  ;;  %v135_v55 = vsel %vm127_vm1, %v114_v41, %v117_v42 }
  0x99   :  { %v140_v51 = vsel %vm130_vm4, %v126_v46, 1326507024  ;;  %v137_v56 = vsel %vm129_vm3, %v120_v43, %v136_v50  ;;  %vm260_vm5 = vcmp.gt.s32.totalorder %v259_v53, 0  ;;  %v131_v62 = vsel %vm127_vm1, %v111_v48, %v114_v41  ;;  %v1724_v50 = vld [vmem:[#allocation2 + $0x64] sm:$0xf0] }
  0x9a   :  { %v141_v57 = vsel %vm129_vm3, %v123_v45, %v140_v51  ;;  %v133_v4 = vsel %vm129_vm3, %v117_v42, %v132_v54  ;;  %v2091_v6 = vsel %vm128_vm2, %v135_v55, %v137_v56  ;;  %v261_v7 = vsel %vm260_vm5, %v259_v53, 0  ;;  %v1563_v54 = vld [vmem:[#allocation2 + $0x68] sm:$0xf0] }
  0x9b   :  { %v2081_v60 = vsel %vm128_vm2, %v139_v49, %v141_v57  ;;  %v2094_v14 = vshll.u32 %v257_v52, 8  ;;  %v2100_v20 = vshrl.u32 %v2083_v61, 16  ;;  %v2104_v21 = vsel %vm128_vm2, %v131_v62, %v133_v4  ;;  %v1738_v57 = vld [vmem:[#allocation5 + $0x54] sm:$0xf0] }
  0x9c   :  { %v147_v13 = vshrl.u32 %v2081_v60, 16  ;;  %v146_v23 = vand.u32 65535, %v2081_v60  ;;  %v168_v25 = vand.u32 65535, %v2091_v6  ;;  %v263_v27 = vand.u32 31, %v261_v7 }
  0x9d   :  { %v1570_v28 = vor.u32 %v1726_v1, %v1569_v63  ;;  %v1574_v29 = vor.u32 %v1725_v2, %v1571_v3  ;;  %v1498_v30 = vor.u32 %v1740_v11, %v1497_v10  ;;  %v1502_v32 = vor.u32 %v1739_v16, %v1499_v17  ;;  %v1737_v63 = vld [vmem:[#allocation5 + $0x54] sm:$0xf]  ;;  %v1491_v1 = vld [vmem:[#allocation5 + $0x58] sm:$0xf0]  ;;  %v1553_v2 = vld [vmem:[#allocation2 + $0x50] sm:$0xf] }
  0x9e   :  { %v2111_v33 = vmul.u32 %v147_v13, %v2097_v19  ;;  %v169_v34 = vshrl.u32 %v2091_v6, 16  ;;  %v2114_v35 = vsub.s32 32, %v263_v27  ;;  %v2117_v18 = vand.u32 65535, %v2094_v14  ;;  %v1722_v3 = vld [vmem:[#allocation2 + $0x54] sm:$0xf0] }
  0x9f   :  { %v2119_v37 = vshrl.u32 %v261_v7, 5  ;;  %v266_v38 = vshll.u32 %v1959_v22, %v263_v27  ;;  %v269_v40 = vshll.u32 %v1960_v24, %v263_v27  ;;  %v2124_v41 = vshrl.u32 %v2094_v14, 16  ;;  %935 = vmatpush.bf16.msra.mxu2 %v1570_v28  ;;  %949 = vmatpush.bf16.msra.mxu3 %v1574_v29  ;;  %v1721_v17 = vld [vmem:[#allocation2 + $0x54] sm:$0xf]  ;;  %v1732_v6 = vld [vmem:[#allocation5 + $0x24] sm:$0xf0] }
  0xa0   :  { %v267_v42 = vshrl.u32 %v1960_v24, %v2114_v35  ;;  %v270_v43 = vshrl.u32 %v1961_v26, %v2114_v35  ;;  %v272_v44 = vshll.u32 %v1961_v26, %v263_v27  ;;  %v275_v45 = vshll.u32 %v1962_v31, %v263_v27  ;;  %828 = vmatpush.bf16.msra.mxu0 %v1498_v30  ;;  %v1561_v24 = vld [vmem:[#allocation2 + $0x60] sm:$0xf] }
  0xa1   :  { %v273_v46 = vshrl.u32 %v1962_v31, %v2114_v35  ;;  %v276_v47 = vshrl.u32 %v1963_v36, %v2114_v35  ;;  %v278_v48 = vshll.u32 %v1963_v36, %v263_v27  ;;  %v279_v49 = vshrl.u32 %v1964_v39, %v2114_v35  ;;  %842 = vmatpush.bf16.msra.mxu1 %v1502_v32  ;;  %v1723_v31 = vld [vmem:[#allocation2 + $0x64] sm:$0xf]  ;;  %v1489_v39 = vld [vmem:[#allocation5 + $0x50] sm:$0xf]  ;;  %v1481_v32 = vld [vmem:[#allocation5 + $0x40] sm:$0xf] }
  0xa2   :  { %v148_v51 = vmul.u32 %v146_v23, %v2097_v19  ;;  %v152_v26 = vshll.u32 %v2111_v33, 16  ;;  %v2141_v52 = vor.u32 %v267_v42, %v266_v38  ;;  %v2143_v53 = vor.u32 %v270_v43, %v269_v40  ;;  %v1736_v38 = vld [vmem:[#allocation5 + $0x44] sm:$0xf0]  ;;  %v1735_v40 = vld [vmem:[#allocation5 + $0x44] sm:$0xf] }
  0xa3   :  { %v2145_v55 = vor.u32 %v273_v46, %v272_v44  ;;  %v277_v56 = vor.u32 %v276_v47, %v275_v45  ;;  %v280_v36 = vor.u32 %v279_v49, %v278_v48  ;;  %vm281_vm6 = vcmp.lt.s32.totalorder %v2119_v37, 1  ;;  %v1483_v42 = vld [vmem:[#allocation5 + $0x48] sm:$0xf0]  ;;  %v1545_v47 = vld [vmem:[#allocation2 + $0x40] sm:$0xf] }
  0xa4   :  { %v2149_v58 = vmul.u32 %v146_v23, %v2100_v20  ;;  %vm284_vm7 = vcmp.lt.s32.totalorder %v2119_v37, 4  ;;  %v289_v59 = vsel %vm281_vm6, %v2141_v52, %v2143_v53  ;;  %v1562_v62 = vor.u32 %v1724_v50, %v1561_v24  ;;  %v1555_v23 = vld [vmem:[#allocation2 + $0x58] sm:$0xf0]  ;;  %v1720_v48 = vld [vmem:[#allocation2 + $0x44] sm:$0xf0] }
  0xa5   :  { %vm283_vm8 = vcmp.lt.s32.totalorder %v2119_v37, 3  ;;  %v290_v4 = vsel %vm284_vm7, %v277_v56, 920167782  ;;  %v293_v7 = vsel %vm281_vm6, %v2143_v53, %v2145_v55  ;;  %v294_v9 = vsel %vm284_vm7, %v280_v36, 1326507024 }
  0xa6   :  { %vm282_vm9 = vcmp.lt.s32.totalorder %v2119_v37, 2  ;;  %v291_v10 = vsel %vm283_vm8, %v2145_v55, %v290_v4  ;;  %v295_v11 = vsel %vm283_vm8, %v277_v56, %v294_v9  ;;  %936 = vmatpush.bf16.msra.mxu2 %v1562_v62  ;;  %v1566_v16 = vor.u32 %v1723_v31, %v1563_v54  ;;  %v1719_v49 = vld [vmem:[#allocation2 + $0x44] sm:$0xf]  ;;  %v1547_v31 = vld [vmem:[#allocation2 + $0x48] sm:$0xf0] }
  0xa7   :  { %vm2171_vm10 = vc.u32 %v148_v51, %v152_v26  ;;  %v2177_v28 = vsel %vm282_vm9, %v289_v59, %v291_v10  ;;  %v296_v29 = vsel %vm282_vm9, %v293_v7, %v295_v11  ;;  %v1490_v30 = vor.u32 %v1738_v57, %v1489_v39  ;;  %v2194_v54 = vld [vmem:[#allocation5 + $0x30] sm:$0xf]  ;;  %v1734_v56 = vld [vmem:[#allocation5 + $0x34] sm:$0xf0]  ;;  %v1733_v59 = vld [vmem:[#allocation5 + $0x34] sm:$0xf] }
  0xa8   :  { %v151_v43 = vmul.u32 %v147_v13, %v2100_v20  ;;  %v2187_v44 = vmul.u32 %v168_v25, %v2097_v19  ;;  %v300_v45 = vand.u32 65535, %v296_v29  ;;  %v301_v46 = vshrl.u32 %v296_v29, 16  ;;  %950 = vmatpush.bf16.msra.mxu3 %v1566_v16  ;;  %v1475_v62 = vld [vmem:[#allocation5 + $0x38] sm:$0xf0]  ;;  %v1718_v4 = vld [vmem:[#allocation2 + $0x34] sm:$0xf0] }
  0xa9   :  { %v2192_v24 = vmul.u32 %v169_v34, %v2097_v19  ;;  %829 = vmatpush.bf16.msra.mxu0 %v1490_v30  ;;  %v1494_v50 = vor.u32 %v1737_v63, %v1491_v1  ;;  %v1554_v60 = vor.u32 %v1722_v3, %v1553_v2  ;;  %v1558_v13 = vor.u32 %v1721_v17, %v1555_v23  ;;  %v1717_v7 = vld [vmem:[#allocation2 + $0x34] sm:$0xf]  ;;  %v1539_v9 = vld [vmem:[#allocation2 + $0x38] sm:$0xf0]  ;;  %v2219_v16 = vld [vmem:[#allocation5 + $0x20] sm:$0xf] }
  0xaa   :  { %v157_v36 = vsel %vm2171_vm10, 1, %v1958_v0  ;;  %v2202_v39 = vmul.u32 %v168_v25, %v2100_v20  ;;  %v2205_v19 = vmul.u32 %v301_v46, %v2117_v18  ;;  %v322_v57 = vand.u32 65535, %v2177_v28  ;;  %v1537_v25 = vld [vmem:[#allocation2 + $0x30] sm:$0xf]  ;;  %v2226_v29 = vld [vmem:[#allocation2 + $0x20] sm:$0xf] }
  0xab   :  { %v154_v63 = vshll.u32 %v2149_v58, 16  ;;  %v2209_v1 = vadd.s32 %v152_v26, %v148_v51  ;;  %v2214_v2 = vmul.u32 %v169_v34, %v2100_v20  ;;  %v323_v3 = vshrl.u32 %v2177_v28, 16  ;;  %843 = vmatpush.bf16.msra.mxu1 %v1494_v50  ;;  %937 = vmatpush.bf16.msra.mxu2 %v1554_v60  ;;  %v2221_v20 = vld [vmem:[#allocation5 + $0x24] sm:$0xf]  ;;  %v1467_v28 = vld [vmem:[#allocation5 + $0x28] sm:$0xf0] }
  0xac   :  { %v302_v10 = vmul.u32 %v300_v45, %v2117_v18  ;;  %v306_v11 = vshll.u32 %v2205_v19, 16  ;;  %951 = vmatpush.bf16.msra.mxu3 %v1558_v13  ;;  %v1482_v51 = vor.u32 %v1736_v38, %v1481_v32  ;;  %v1486_v26 = vor.u32 %v1735_v40, %v1483_v42  ;;  %v2228_v30 = vld [vmem:[#allocation2 + $0x24] sm:$0xf0]  ;;  %v1715_v40 = vld [vmem:[#allocation2 + $0x24] sm:$0xf] }
  0xad   :  { %v159_v34 = vadd.s32 %v157_v36, %v151_v43  ;;  %v2224_v17 = vmul.u32 %v300_v45, %v2124_v41  ;;  %v1546_v23 = vor.u32 %v1720_v48, %v1545_v47  ;;  %v1550_v27 = vor.u32 %v1719_v49, %v1547_v31  ;;  %v1531_v42 = vld [vmem:[#allocation2 + $0x28] sm:$0xf0]  ;;  %v2235_v43 = vld [vmem:[#allocation5 + $0x10] sm:$0xf]  ;;  %v2244_v49 = vld [vmem:[#allocation5 + $0x14] sm:$0xf0] }
  0xae   :  { %v305_v50 = vmul.u32 %v301_v46, %v2124_v41  ;;  %vm310_vm11 = vc.u32 %v302_v10, %v306_v11  ;;  %v2232_v32 = vmul.u32 %v322_v57, %v2117_v18  ;;  %830 = vmatpush.bf16.msra.mxu0 %v1482_v51  ;;  %v1474_v38 = vor.u32 %v1734_v56, %v2194_v54  ;;  %v2246_v60 = vld [vmem:[#allocation5 + $0x14] sm:$0xf]  ;;  %v1459_v56 = vld [vmem:[#allocation5 + $0x18] sm:$0xf0]  ;;  %v2251_v36 = vld [vmem:[#allocation2 + $0x10] sm:$0xf] }
  0xaf   :  { %v311_v45 = vsel %vm310_vm11, 1, %v1958_v0  ;;  %v2239_v47 = vmul.u32 %v323_v3, %v2117_v18  ;;  %v2242_v48 = vmul.u32 %v322_v57, %v2124_v41  ;;  %844 = vmatpush.bf16.msra.mxu1 %v1486_v26  ;;  %v1478_v46 = vor.u32 %v1733_v59, %v1475_v62  ;;  %938 = vmatpush.bf16.msra.mxu2 %v1546_v23  ;;  %v2253_v18 = vld [vmem:[#allocation2 + $0x14] sm:$0xf0]  ;;  %v1713_v26 = vld [vmem:[#allocation2 + $0x14] sm:$0xf] }
  0xb0   :  { %v2249_v13 = vmul.u32 %v323_v3, %v2124_v41  ;;  %952 = vmatpush.bf16.msra.mxu3 %v1550_v27  ;;  %v1538_v31 = vor.u32 %v1718_v4, %v1537_v25  ;;  %v1542_v54 = vor.u32 %v1717_v7, %v1539_v9  ;;  %v308_v57 = vshll.u32 %v2224_v17, 16  ;;  %v1449_v9 = vld [vmem:[#allocation5] sm:$0xf]  ;;  %v1727_v23 = vld [vmem:[#allocation5 + $0x4] sm:$0xf] }
  0xb1   :  { %v312_v51 = vadd.s32 %v306_v11, %v302_v10  ;;  %v1466_v59 = vor.u32 %v1732_v6, %v2219_v16  ;;  %v1470_v62 = vor.u32 %v2221_v20, %v1467_v28  ;;  %v313_v41 = vadd.s32 %v311_v45, %v305_v50  ;;  %v1728_v10 = vld [vmem:[#allocation5 + $0x4] sm:$0xf0]  ;;  %v1451_v27 = vld [vmem:[#allocation5 + $0x8] sm:$0xf0] }
  0xb2   :  { %831 = vmatpush.bf16.msra.mxu0 %v1474_v38  ;;  %v1530_v3 = vor.u32 %v2228_v30, %v2226_v29  ;;  %v1534_v25 = vor.u32 %v1715_v40, %v1531_v42  ;;  %v1458_v4 = vor.u32 %v2244_v49, %v2235_v43  ;;  %v1462_v7 = vor.u32 %v2246_v60, %v1459_v56  ;;  %v1513_v40 = vld [vmem:[#allocation2] sm:$0xf]  ;;  %v1712_v42 = vld [vmem:[#allocation2 + $0x4] sm:$0xf0]  ;;  %v1711_v60 = vld [vmem:[#allocation2 + $0x4] sm:$0xf] }
  0xb3   :  { %845 = vmatpush.bf16.msra.mxu1 %v1478_v46  ;;  %v153_v11 = vshrl.u32 %v2111_v33, 16  ;;  %vm160_vm12 = vc.u32 %v2209_v1, %v154_v63  ;;  %v174_v16 = vshll.u32 %v2192_v24, 16  ;;  %939 = vmatpush.bf16.msra.mxu2 %v1538_v31  ;;  %v1522_v6 = vor.u32 %v2253_v18, %v2251_v36  ;;  %v1515_v31 = vld [vmem:[#allocation2 + $0x8] sm:$0xf0] }
  0xb4   :  { %953 = vmatpush.bf16.msra.mxu3 %v1542_v54  ;;  %v1526_v20 = vor.u32 %v1713_v26, %v1523_v15  ;;  %v161_v28 = vsel %vm160_vm12, 1, %v1958_v0  ;;  %v176_v29 = vshll.u32 %v2202_v39, 16  ;;  %vm314_vm14 = vc.u32 %v312_v51, %v308_v57 }
  0xb5   :  { %v163_v30 = vadd.s32 %v161_v28, %v159_v34  ;;  %vm178_vm13 = vc.u32 %v2187_v44, %v174_v16  ;;  %v180_v33 = vadd.s32 %v174_v16, %v2187_v44  ;;  %v1450_v63 = vor.u32 %v1728_v10, %v1449_v9 }
  0xb6   :  { %832 = vmatpush.bf16.msra.mxu0 %v1466_v59  ;;  %v179_v1 = vsel %vm178_vm13, 1, %v1958_v0  ;;  %v315_v50 = vsel %vm314_vm14, 1, %v1958_v0  ;;  %v328_v15 = vshll.u32 %v2239_v47, 16  ;;  %v1454_v38 = vor.u32 %v1727_v23, %v1451_v27 }
  0xb7   :  { %846 = vmatpush.bf16.msra.mxu1 %v1470_v62  ;;  %v164_v43 = vadd.s32 %v163_v30, %v153_v11  ;;  %v181_v34 = vadd.s32 %v179_v1, %v2214_v2  ;;  %vm182_vm15 = vc.u32 %v180_v33, %v176_v29  ;;  %940 = vmatpush.bf16.msra.mxu2 %v1530_v3  ;;  %v155_v44 = vshrl.u32 %v2149_v58, 16 }
  0xb8   :  { %954 = vmatpush.bf16.msra.mxu3 %v1534_v25  ;;  %v175_v45 = vshrl.u32 %v2192_v24, 16  ;;  %v183_v46 = vsel %vm182_vm15, 1, %v1958_v0  ;;  %v317_v49 = vadd.s32 %v315_v50, %v313_v41  ;;  %v307_v56 = vshrl.u32 %v2205_v19, 16 }
  0xb9   :  { %v185_v54 = vadd.s32 %v183_v46, %v181_v34  ;;  %vm332_vm0 = vc.u32 %v2232_v32, %v328_v15  ;;  %v334_v36 = vadd.s32 %v328_v15, %v2232_v32  ;;  %v1514_v2 = vor.u32 %v1712_v42, %v1513_v40 }
  0xba   :  { %833 = vmatpush.bf16.msra.mxu0 %v1458_v4  ;;  %v165_v18 = vadd.s32 %v164_v43, %v155_v44  ;;  %v330_v57 = vshll.u32 %v2242_v48, 16  ;;  %v333_v58 = vsel %vm332_vm0, 1, %v1958_v0  ;;  %v177_v24 = vshrl.u32 %v2202_v39, 16 }
  0xbb   :  { %847 = vmatpush.bf16.msra.mxu1 %v1462_v7  ;;  %v186_v51 = vadd.s32 %v185_v54, %v175_v45  ;;  %v318_v59 = vadd.s32 %v317_v49, %v307_v56  ;;  %v335_v62 = vadd.s32 %v333_v58, %v2249_v13  ;;  %v286_v19 = vsel %vm284_vm7, %v2145_v55, 2102212464  ;;  %941 = vmatpush.bf16.msra.mxu2 %v1522_v6 }
  0xbc   :  { %955 = vmatpush.bf16.msra.mxu3 %v1526_v20  ;;  %v1518_v32 = vor.u32 %v1711_v60, %v1515_v31  ;;  %v184_v26 = vadd.s32 %v180_v33, %v176_v29  ;;  %vm336_vm1 = vc.u32 %v334_v36, %v330_v57  ;;  %v265_v41 = vshrl.u32 %v1959_v22, %v2114_v35 }
  0xbd   :  { %v187_v3 = vadd.s32 %v186_v51, %v177_v24  ;;  %v309_v25 = vshrl.u32 %v2224_v17, 16  ;;  %v337_v39 = vsel %vm336_vm1, 1, %v1958_v0  ;;  %v329_v13 = vshrl.u32 %v2239_v47, 16 }
  0xbe   :  { %834 = vmatpush.bf16.msra.mxu0 %v1450_v63  ;;  %vm190_vm2 = vc.u32 %v165_v18, %v184_v26  ;;  %v339_v4 = vadd.s32 %v337_v39, %v335_v62  ;;  %v285_v55 = vsel %vm281_vm6, %v265_v41, %v2141_v52  ;;  %v287_v7 = vsel %vm283_vm8, %v2143_v53, %v286_v19 }
  0xbf   :  { %848 = vmatpush.bf16.msra.mxu1 %v1454_v38  ;;  %v191_v22 = vadd.s32 1, %v187_v3  ;;  %v319_v35 = vadd.s32 %v318_v59, %v309_v25  ;;  %v188_v17 = vmul.u32 %v2083_v61, %v2104_v21  ;;  %942 = vmatpush.bf16.msra.mxu2 %v1514_v2  ;;  %v331_v0 = vshrl.u32 %v2242_v48, 16 }
  0xc0   :  { %956 = vmatpush.bf16.msra.mxu3 %v1518_v32  ;;  %v340_v47 = vadd.s32 %v339_v4, %v329_v13  ;;  %v338_v10 = vadd.s32 %v334_v36, %v330_v57  ;;  %v288_v52 = vsel %vm282_vm9, %v285_v55, %v287_v7  ;;  %v189_v42 = vadd.s32 %v184_v26, %v165_v18 }
  0xc1   :  { %v192_v9 = vsel %vm190_vm2, %v191_v22, %v187_v3  ;;  %v342_v20 = vmul.u32 %v2094_v14, %v288_v52  ;;  %vm97_vm8 = vcmp.lt.s32.totalorder %v2042_v5, 0  ;;  %vm2314_vm9 = vcmp.le.f32.partialorder %v95_v8, 0.7853982 }
  0xc2   :  { %v193_v11 = vadd.s32 %v192_v9, %v188_v17  ;;  %v341_v16 = vadd.s32 %v340_v47, %v331_v0  ;;  %vm344_vm3 = vc.u32 %v319_v35, %v338_v10  ;;  %v343_v56 = vadd.s32 %v338_v10, %v319_v35 }
  0xc3   :  { %vm251_vm10 = vcmp.lt.s32.totalorder %v2046_v12, 0  ;;  %v2429_v47 = vand.u32 2147483647, %v2046_v12 }
  0xc4   :  { %v194_v53 = vadd.s32 536870912, %v193_v11  ;;  %v345_v6 = vadd.s32 1, %v341_v16 }
  0xc5   :  { %vm250_vm11 = vcmp.le.f32.partialorder %v2429_v47, 0.7853982  ;;  %v1701_v47 = vld [vmem:[#allocation7 + $0xf0] sm:$0xf] }
  0xc6   :  { %v195_v23 = vshrl.u32 %v194_v53, 30  ;;  %v346_v27 = vsel %vm344_vm3, %v345_v6, %v341_v16 }
  0xc7   :  { %v347_v61 = vadd.s32 %v346_v27, %v342_v20 }
  0xc8   :  { %v196_v21 = vshll.u32 %v195_v23, 30  ;;  %v219_v7 = vsub.s32 4, %v195_v23 }
  0xc9   :  { %v348_v28 = vadd.s32 536870912, %v347_v61 }
  0xca   :  { %v197_v29 = vsub.s32 %v193_v11, %v196_v21  ;;  %v220_v10 = vsel %vm97_vm8, %v219_v7, %v195_v23 }
  0xcb   :  { %v2308_v48 = vshrl.u32 %v348_v28, 30 }
  0xcc   :  { %vm198_vm4 = vcmp.lt.s32.totalorder %v197_v29, 0  ;;  %v199_v30 = vsub.s32 0, %v197_v29 }
  0xcd   :  { %v350_v37 = vshll.u32 %v2308_v48, 30  ;;  %v373_v8 = vsub.s32 4, %v2308_v48 }
  0xce   :  { %v200_v33 = vsel %vm198_vm4, %v199_v30, %v197_v29 }
  0xcf   :  { %v201_v63 = vclz %v200_v33  ;;  %v351_v1 = vsub.s32 %v347_v61, %v350_v37  ;;  %v374_v27 = vsel %vm251_vm10, %v373_v8, %v2308_v48  ;;  %v222_v61 = vsel %vm2314_vm9, 0, %v220_v10  ;;  %v1758_v8 = vld [vmem:[#allocation7 + $0x74] sm:$0xf0]  ;;  %v1639_v10 = vld [vmem:[#allocation7 + $0x78] sm:$0xf0] }
  0xd0   :  { %v376_v37 = vsel %vm250_vm11, 0, %v374_v27  ;;  %v1756_v27 = vld [vmem:[#allocation7 + $0x64] sm:$0xf0] }
  0xd1   :  { %v1436_v50 = vadd.s32 4294967294, %v201_v63  ;;  %vm352_vm5 = vcmp.lt.s32.totalorder %v351_v1, 0  ;;  %v353_v15 = vsub.s32 0, %v351_v1 }
  0xd3   :  { %vm1437_vm6 = vcmp.lt.s32.totalorder %v1436_v50, 0  ;;  %v354_v14 = vsel %vm352_vm5, %v353_v15, %v351_v1 }
  0xd4   :  { %v204_v38 = vsel %vm1437_vm6, 0, %v1436_v50  ;;  %v355_v40 = vclz %v354_v14  ;;  %v548_v50 = vadd.s32 3, %v222_v61 }
  0xd5   :  { %v205_v43 = vsub.s32 32, %v204_v38  ;;  %v209_v34 = vsub.s32 4294967266, %v204_v38  ;;  %v206_v45 = vshll.u32 %v197_v29, %v204_v38 }
  0xd6   :  { %v1439_v44 = vadd.s32 4294967294, %v355_v40  ;;  %v703_v40 = vadd.s32 3, %v376_v37 }
  0xd7   :  { %v207_v46 = vshrl.u32 %v189_v42, %v205_v43  ;;  %v210_v49 = vadd.s32 127, %v209_v34  ;;  %v239_v34 = vand.u32 3, %v222_v61  ;;  %v1693_v61 = vld [vmem:[#allocation7 + $0xe0] sm:$0xf] }
  0xd8   :  { %vm1440_vm7 = vcmp.lt.s32.totalorder %v1439_v44, 0 }
  0xd9   :  { %v208_v60 = vor.u32 %v207_v46, %v206_v45  ;;  %v211_v31 = vshll.u32 %v210_v49, 23  ;;  %v358_v54 = vsel %vm1440_vm7, 0, %v1439_v44  ;;  %v549_v45 = vand.u32 3, %v548_v50  ;;  %v1621_v50 = vld [vmem:[#allocation7 + $0x50] sm:$0xf] }
  0xda   :  { %v359_v36 = vsub.s32 32, %v358_v54  ;;  %v363_v2 = vsub.s32 4294967266, %v358_v54  ;;  %v360_v58 = vshll.u32 %v351_v1, %v358_v54  ;;  %v393_v54 = vand.u32 3, %v376_v37 }
  0xdb   :  { %v212_v57 = vor.u32 4788187, %v211_v31  ;;  %v215_v62 = vcvt.s32.f32 %v208_v60  ;;  %v704_v31 = vand.u32 3, %v703_v40  ;;  %vm240_vm12 = vcmp.lt.s32.totalorder %v239_v34, 2  ;;  %v1770_v40 = vld [vmem:[#allocation7 + $0xd4] sm:$0xf0] }
  0xdc   :  { %v361_v24 = vshrl.u32 %v343_v56, %v359_v36  ;;  %v364_v51 = vadd.s32 127, %v363_v2  ;;  %vm550_vm13 = vcmp.lt.s32.totalorder %v549_v45, 2  ;;  %vm551_vm14 = vcmp.eq.s32.totalorder %v549_v45, 0 }
  0xdd   :  { %v213_v59 = vand.u32 2147483647, %v212_v57  ;;  %vm241_vm15 = vcmp.eq.s32.totalorder %v239_v34, 0  ;;  %vm244_vm0 = vcmp.eq.s32.totalorder %v239_v34, 2  ;;  %vm554_vm1 = vcmp.eq.s32.totalorder %v549_v45, 2 }
  0xde   :  { %v362_v18 = vor.u32 %v361_v24, %v360_v58  ;;  %v365_v19 = vshll.u32 %v364_v51, 23  ;;  %vm705_vm2 = vcmp.lt.s32.totalorder %v704_v31, 2  ;;  %vm394_vm3 = vcmp.lt.s32.totalorder %v393_v54, 2  ;;  %v1687_v45 = vld [vmem:[#allocation7 + $0xd8] sm:$0xf0] }
  0xdf   :  { %v216_v32 = vmul.f32 %v215_v62, %v213_v59  ;;  %vm395_vm4 = vcmp.eq.s32.totalorder %v393_v54, 0  ;;  %vm706_vm5 = vcmp.eq.s32.totalorder %v704_v31, 0  ;;  %vm709_vm6 = vcmp.eq.s32.totalorder %v704_v31, 2  ;;  %v1752_v31 = vld [vmem:[#allocation7 + $0x44] sm:$0xf0] }
  0xe0   :  { %v366_v26 = vor.u32 4788187, %v365_v19  ;;  %v369_v25 = vcvt.s32.f32 %v362_v18  ;;  %vm398_vm7 = vcmp.eq.s32.totalorder %v393_v54, 2  ;;  %v1677_v54 = vld [vmem:[#allocation7 + $0xc0] sm:$0xf] }
  0xe1   :  { %v217_v41 = vxor.u32 2147483648, %v216_v32 }
  0xe2   :  { %v367_v3 = vand.u32 2147483647, %v366_v26 }
  0xe3   :  { %v218_v13 = vsel %vm97_vm8, %v217_v41, %v216_v32  ;;  %vm238_vm8 = vweird.f32 %v2042_v5 }
  0xe4   :  { %v221_v4 = vsel %vm2314_vm9, %v2042_v5, %v218_v13  ;;  %v370_v55 = vmul.f32 %v369_v25, %v367_v3  ;;  %vm392_vm9 = vweird.f32 %v2046_v12 }
  0xe5   :  { %v223_v22 = vmul.f32 %v221_v4, %v221_v4 }
  0xe6   :  { %v371_v35 = vxor.u32 2147483648, %v370_v55 }
  0xe7   :  { %v224_v17 = vmul.f32 -0.001358992, %v223_v22  ;;  %v231_v0 = vmul.f32 -0.00019511016, %v223_v22 }
  0xe8   :  { %v372_v9 = vsel %vm251_vm10, %v371_v35, %v370_v55 }
  0xe9   :  { %v225_v52 = vadd.f32 0.041655596, %v224_v17  ;;  %v232_v11 = vadd.f32 0.008332121, %v231_v0  ;;  %v375_v16 = vsel %vm250_vm11, %v2046_v12, %v372_v9  ;;  %v1637_v0 = vld [vmem:[#allocation7 + $0x70] sm:$0xf] }
  0xea   :  { %v377_v53 = vmul.f32 %v375_v16, %v375_v16  ;;  %v1638_v5 = vor.u32 %v1758_v8, %v1637_v0  ;;  %v1774_v9 = vld [vmem:[#allocation7 + $0xf4] sm:$0xf0]  ;;  %v1757_v12 = vld [vmem:[#allocation7 + $0x74] sm:$0xf] }
  0xeb   :  { %v226_v6 = vmul.f32 %v225_v52, %v223_v22  ;;  %v233_v20 = vmul.f32 %v232_v11, %v223_v22  ;;  %v1702_v52 = vor.u32 %v1774_v9, %v1701_v47  ;;  %v1642_v11 = vor.u32 %v1757_v12, %v1639_v10  ;;  %v1765_v47 = vld [vmem:[#allocation7 + $0xb4] sm:$0xf] }
  0xec   :  { %v378_v21 = vmul.f32 -0.001358992, %v377_v53  ;;  %v385_v28 = vmul.f32 -0.00019511016, %v377_v53  ;;  %1253 = vmatpush.bf16.msrb.mxu0 %v1638_v5  ;;  %v1671_v5 = vld [vmem:[#allocation7 + $0xb8] sm:$0xf0] }
  0xed   :  { %v227_v29 = vadd.f32 -0.4999988, %v226_v6  ;;  %v234_v30 = vadd.f32 -0.16666654, %v233_v20  ;;  %1267 = vmatpush.bf16.msrb.mxu1 %v1702_v52  ;;  %1281 = vmatpush.bf16.msrb.mxu2 %v1642_v11  ;;  %v1629_v20 = vld [vmem:[#allocation7 + $0x60] sm:$0xf]  ;;  %v1674_v9 = vor.u32 %v1765_v47, %v1671_v5 }
  0xee   :  { %v379_v33 = vadd.f32 0.041655596, %v378_v21  ;;  %v386_v63 = vadd.f32 0.008332121, %v385_v28  ;;  %v1630_v21 = vor.u32 %v1756_v27, %v1629_v20  ;;  %v1772_v28 = vld [vmem:[#allocation7 + $0xe4] sm:$0xf0] }
  0xef   :  { %v228_v23 = vmul.f32 %v227_v29, %v223_v22  ;;  %v235_v1 = vmul.f32 %v234_v30, %v223_v22  ;;  %v1755_v29 = vld [vmem:[#allocation7 + $0x64] sm:$0xf]  ;;  %v1631_v30 = vld [vmem:[#allocation7 + $0x68] sm:$0xf0]  ;;  %v1694_v37 = vor.u32 %v1772_v28, %v1693_v61  ;;  %v1597_v52 = vld [vmem:[#allocation7 + $0x20] sm:$0xf] }
  0xf0   :  { %v380_v15 = vmul.f32 %v379_v33, %v377_v53  ;;  %v387_v14 = vmul.f32 %v386_v63, %v377_v53  ;;  %v1634_v33 = vor.u32 %v1755_v29, %v1631_v30  ;;  %v1771_v63 = vld [vmem:[#allocation7 + $0xe4] sm:$0xf]  ;;  %1254 = vmatpush.bf16.msrb.mxu0 %v1630_v21  ;;  %v1748_v11 = vld [vmem:[#allocation7 + $0x24] sm:$0xf0]  ;;  %v1599_v27 = vld [vmem:[#allocation7 + $0x28] sm:$0xf0] }
  0xf1   :  { %v236_v38 = vadd.f32 1.0, %v235_v1  ;;  %v229_v42 = vadd.f32 1.0, %v228_v23  ;;  %v1695_v23 = vld [vmem:[#allocation7 + $0xe8] sm:$0xf0]  ;;  %1268 = vmatpush.bf16.msrb.mxu1 %v1694_v37  ;;  %v1747_v20 = vld [vmem:[#allocation7 + $0x24] sm:$0xf] }
  0xf2   :  { %v381_v43 = vadd.f32 -0.4999988, %v380_v15  ;;  %v388_v48 = vadd.f32 -0.16666654, %v387_v14  ;;  %v1698_v1 = vor.u32 %v1771_v63, %v1695_v23  ;;  %1282 = vmatpush.bf16.msrb.mxu2 %v1634_v33  ;;  %v1754_v15 = vld [vmem:[#allocation7 + $0x54] sm:$0xf0]  ;;  %v1602_v29 = vor.u32 %v1747_v20, %v1599_v27 }
  0xf3   :  { %v237_v44 = vmul.f32 %v236_v38, %v221_v4  ;;  %v245_v56 = vxor.u32 2147483648, %v229_v42  ;;  %v1685_v14 = vld [vmem:[#allocation7 + $0xd0] sm:$0xf]  ;;  %v1622_v38 = vor.u32 %v1754_v15, %v1621_v50  ;;  %v1763_v30 = vld [vmem:[#allocation7 + $0xa4] sm:$0xf] }
  0xf4   :  { %v382_v46 = vmul.f32 %v381_v43, %v377_v53  ;;  %v389_v49 = vmul.f32 %v388_v48, %v377_v53  ;;  %v1703_v53 = vld [vmem:[#allocation7 + $0xf8] sm:$0xf0]  ;;  %v1686_v48 = vor.u32 %v1770_v40, %v1685_v14  ;;  %v1663_v37 = vld [vmem:[#allocation7 + $0xa8] sm:$0xf0]  ;;  %v1746_v50 = vld [vmem:[#allocation7 + $0x14] sm:$0xf0] }
  0xf5   :  { %v242_v60 = vxor.u32 2147483648, %v237_v44  ;;  %v556_v62 = vsel %vm554_vm1, %v245_v56, %v237_v44  ;;  %v246_v18 = vsel %vm244_vm0, %v245_v56, %v237_v44  ;;  %v1623_v43 = vld [vmem:[#allocation7 + $0x58] sm:$0xf0]  ;;  %v1769_v44 = vld [vmem:[#allocation7 + $0xd4] sm:$0xf]  ;;  %1255 = vmatpush.bf16.msrb.mxu0 %v1622_v38  ;;  %v1666_v23 = vor.u32 %v1763_v30, %v1663_v37 }
  0xf6   :  { %v383_v36 = vadd.f32 1.0, %v382_v46  ;;  %v390_v2 = vadd.f32 1.0, %v389_v49  ;;  %v2342_v46 = vld [vmem:[%s2419_s4] sm:$0x3]  ;;  %v1690_v49 = vor.u32 %v1769_v44, %v1687_v45  ;;  %1269 = vmatpush.bf16.msrb.mxu1 %v1686_v48  ;;  %v1653_v15 = vld [vmem:[#allocation7 + $0x90] sm:$0xf] }
  0xf7   :  { %v553_v24 = vsel %vm551_vm14, %v229_v42, %v242_v60  ;;  %v243_v51 = vsel %vm241_vm15, %v229_v42, %v242_v60  ;;  %v1753_v42 = vld [vmem:[#allocation7 + $0x54] sm:$0xf]  ;;  %v1613_v60 = vld [vmem:[#allocation7 + $0x40] sm:$0xf]  ;;  %v1591_v48 = vld [vmem:[#allocation7 + $0x18] sm:$0xf0] }
  0xf8   :  { %v391_v57 = vmul.f32 %v390_v2, %v375_v16  ;;  %v399_v58 = vxor.u32 2147483648, %v383_v36  ;;  %v557_v19 = vsel %vm550_vm13, %v553_v24, %v556_v62  ;;  %v247_v32 = vsel %vm240_vm12, %v243_v51, %v246_v18  ;;  %v1773_v16 = vld [vmem:[#allocation7 + $0xf4] sm:$0xf]  ;;  %v1751_v2 = vld [vmem:[#allocation7 + $0x44] sm:$0xf] }
  0xf9   :  { %v558_v4 = vsel %vm238_vm8, nan, %v557_v19  ;;  %v248_v7 = vsel %vm238_vm8, nan, %v247_v32  ;;  %v1706_v6 = vor.u32 %v1773_v16, %v1703_v53  ;;  %v1626_v34 = vor.u32 %v1753_v42, %v1623_v43  ;;  %v1767_v62 = vld [vmem:[#allocation7 + $0xc4] sm:$0xf]  ;;  %v1679_v18 = vld [vmem:[#allocation7 + $0xc8] sm:$0xf0] }
  0xfa   :  { %v396_v59 = vxor.u32 2147483648, %v391_v57  ;;  %v711_v41 = vsel %vm709_vm6, %v399_v58, %v391_v57  ;;  %v400_v25 = vsel %vm398_vm7, %v399_v58, %v391_v57  ;;  %v1614_v56 = vor.u32 %v1752_v31, %v1613_v60  ;;  %v1615_v57 = vld [vmem:[#allocation7 + $0x48] sm:$0xf0]  ;;  %v1661_v16 = vld [vmem:[#allocation7 + $0xa0] sm:$0xf] }
  0xfb   :  { %1295 = vmatpush.bf16.msrb.mxu3 %v1706_v6  ;;  %1283 = vmatpush.bf16.msrb.mxu2 %v1626_v34  ;;  %v965_v19 = vperm.slane %v2342_v46, 0  ;;  %v966_v32 = vperm.slane %v2342_v46, 1  ;;  %v1598_v53 = vor.u32 %v1748_v11, %v1597_v52  ;;  %v1764_v6 = vld [vmem:[#allocation7 + $0xa4] sm:$0xf0]  ;;  %v1762_v42 = vld [vmem:[#allocation7 + $0x94] sm:$0xf0] }
  0xfc   :  { %v708_v26 = vsel %vm706_vm5, %v383_v36, %v396_v59  ;;  %v397_v3 = vsel %vm395_vm4, %v383_v36, %v396_v59  ;;  %v1768_v36 = vld [vmem:[#allocation7 + $0xc4] sm:$0xf0]  ;;  %v1618_v59 = vor.u32 %v1751_v2, %v1615_v57  ;;  %1256 = vmatpush.bf16.msrb.mxu0 %v1614_v56  ;;  %v1662_v28 = vor.u32 %v1764_v6, %v1661_v16  ;;  %v1745_v43 = vld [vmem:[#allocation7 + $0x14] sm:$0xf]  ;;  %v1655_v31 = vld [vmem:[#allocation7 + $0x98] sm:$0xf0] }
  0xfd   :  { %v712_v39 = vsel %vm705_vm2, %v708_v26, %v711_v41  ;;  %v401_v13 = vsel %vm394_vm3, %v397_v3, %v400_v25  ;;  %v1678_v51 = vor.u32 %v1768_v36, %v1677_v54  ;;  %v1682_v26 = vor.u32 %v1767_v62, %v1679_v18  ;;  %v1605_v41 = vld [vmem:[#allocation7 + $0x30] sm:$0xf]  ;;  %v1750_v3 = vld [vmem:[#allocation7 + $0x34] sm:$0xf0]  ;;  %v1761_v60 = vld [vmem:[#allocation7 + $0x94] sm:$0xf] }
  0xfe   :  { %v713_v55 = vsel %vm392_vm9, nan, %v712_v39  ;;  %v402_v22 = vsel %vm392_vm9, nan, %v401_v13  ;;  %v1669_v25 = vld [vmem:[#allocation7 + $0xb0] sm:$0xf]  ;;  %v1654_v45 = vor.u32 %v1762_v42, %v1653_v15  ;;  %v1658_v54 = vor.u32 %v1761_v60, %v1655_v31  ;;  %v1581_v2 = vld [vmem:[#allocation7] sm:$0xf] }
  0xff   :  { %v714_v35 = vpack.c.bf16 %v713_v55, %v558_v4  ;;  %v403_v17 = vpack.c.bf16 %v402_v22, %v248_v7  ;;  %1296 = vmatpush.bf16.msrb.mxu3 %v1698_v1  ;;  %1270 = vmatpush.bf16.msrb.mxu1 %v1678_v51  ;;  %v1606_v4 = vor.u32 %v1750_v3, %v1605_v41  ;;  %v1766_v55 = vld [vmem:[#allocation7 + $0xb4] sm:$0xf0]  ;;  %v1749_v7 = vld [vmem:[#allocation7 + $0x34] sm:$0xf]  ;;  %v1607_v22 = vld [vmem:[#allocation7 + $0x38] sm:$0xf0] }
 0x100   :  { %1284 = vmatpush.bf16.msrb.mxu2 %v1618_v59  ;;  %v1670_v0 = vor.u32 %v1766_v55, %v1669_v25  ;;  %v1610_v8 = vor.u32 %v1749_v7, %v1607_v22  ;;  %v1589_v1 = vld [vmem:[#allocation7 + $0x10] sm:$0xf]  ;;  %v1744_v57 = vld [vmem:[#allocation7 + $0x4] sm:$0xf0]  ;;  %v1743_v59 = vld [vmem:[#allocation7 + $0x4] sm:$0xf] }
 0x101   :  { %835 = vmatmul.bf16.vlgmr.msra.gmra.mxu0 %v714_v35  ;;  %849 = vmatmul.bf16.vlgmr.msra.gmra.mxu1 %v714_v35  ;;  %v1590_v40 = vor.u32 %v1746_v50, %v1589_v1  ;;  %v1760_v51 = vld [vmem:[#allocation7 + $0x84] sm:$0xf0]  ;;  %v1583_v62 = vld [vmem:[#allocation7 + $0x8] sm:$0xf0]  ;;  %v1759_v3 = vld [vmem:[#allocation7 + $0x84] sm:$0xf] }
 0x102   :  { %943 = vmatmul.bf16.vlgmr.msra.gmra.mxu2 %v403_v17  ;;  %957 = vmatmul.bf16.vlgmr.msra.gmra.mxu3 %v403_v17 }
 0x103   :  { %1297 = vmatpush.bf16.msrb.mxu3 %v1690_v49  ;;  %1257 = vmatpush.bf16.msrb.mxu0 %v1606_v4  ;;  %v1594_v49 = vor.u32 %v1745_v43, %v1591_v48 }
 0x104   :  { %1271 = vmatpush.bf16.msrb.mxu1 %v1670_v0  ;;  %1285 = vmatpush.bf16.msrb.mxu2 %v1610_v8 }
 0x107   :  { %1298 = vmatpush.bf16.msrb.mxu3 %v1682_v26  ;;  %1258 = vmatpush.bf16.msrb.mxu0 %v1598_v53 }
 0x108   :  { %1272 = vmatpush.bf16.msrb.mxu1 %v1662_v28  ;;  %1286 = vmatpush.bf16.msrb.mxu2 %v1602_v29 }
 0x10b   :  { %1299 = vmatpush.bf16.msrb.mxu3 %v1674_v9  ;;  %1259 = vmatpush.bf16.msrb.mxu0 %v1590_v40 }
 0x10c   :  { %1273 = vmatpush.bf16.msrb.mxu1 %v1654_v45  ;;  %1287 = vmatpush.bf16.msrb.mxu2 %v1594_v49 }
 0x10f   :  { %1300 = vmatpush.bf16.msrb.mxu3 %v1666_v23 }
 0x113   :  { %1301 = vmatpush.bf16.msrb.mxu3 %v1658_v54 }
 0x17e   :  { %v836_v58 = vpop.f32.mrf.mxu0  ;;  %v850_v24 = vpop.f32.mrf.mxu1 }
 0x185   :  { %v944_v39 = vpop.f32.mrf.mxu2  ;;  %v958_v13 = vpop.f32.mrf.mxu3 }
 0x186   :  { %v945_v35 = vadd.f32 %v944_v39, %v836_v58  ;;  %v959_v17 = vadd.f32 %v958_v13, %v850_v24  ;;  %v838_v33 = vpop.f32.mrf.mxu0  ;;  %v852_v63 = vpop.f32.mrf.mxu1  ;;  %v1645_v58 = vld [vmem:[#allocation7 + $0x80] sm:$0xf]  ;;  %v1582_v24 = vor.u32 %v1744_v57, %v1581_v2  ;;  %v1647_v39 = vld [vmem:[#allocation7 + $0x88] sm:$0xf0] }
 0x187   :  { %v1646_v41 = vor.u32 %v1760_v51, %v1645_v58  ;;  %v1650_v4 = vor.u32 %v1759_v3, %v1647_v39 }
 0x188   :  { %v2348_v12 = vadd.f32 %v965_v19, %v945_v35  ;;  %v2352_v10 = vadd.f32 %v966_v32, %v959_v17  ;;  %1260 = vmatpush.bf16.msrb.mxu0 %v1582_v24 }
 0x189   :  { %1274 = vmatpush.bf16.msrb.mxu1 %v1646_v41  ;;  %1302 = vmatpush.bf16.msrb.mxu3 %v1650_v4 }
 0x18a   :  { %v1575_v61 = vmul.f32 -1.442695, %v2348_v12  ;;  %v1576_v21 = vmul.f32 -1.442695, %v2352_v10 }
 0x18c   :  { %1793 = vpow2.f32 %v1575_v61 }
 0x18d   :  { %1795 = vpow2.f32 %v1576_v21  ;;  %v946_v14 = vpop.f32.mrf.mxu2  ;;  %v960_v38 = vpop.f32.mrf.mxu3 }
 0x18e   :  { %v947_v34 = vadd.f32 %v946_v14, %v838_v33  ;;  %v961_v44 = vadd.f32 %v960_v38, %v852_v63 }
 0x190   :  { %v2358_v56 = vadd.f32 %v965_v19, %v947_v34  ;;  %v2362_v36 = vadd.f32 %v966_v32, %v961_v44  ;;  %v1586_v19 = vor.u32 %v1743_v59, %v1583_v62 }
 0x192   :  { %v1794_v18 = vpop.eup %1793  ;;  %v1577_v26 = vmul.f32 -1.442695, %v2358_v56  ;;  %v1578_v32 = vmul.f32 -1.442695, %v2362_v36  ;;  %1288 = vmatpush.bf16.msrb.mxu2 %v1586_v19 }
 0x193   :  { %v1796_v25 = vpop.eup %1795  ;;  %v985_v46 = vadd.f32 1.0, %v1794_v18 }
 0x194   :  { %v986_v13 = vadd.f32 1.0, %v1796_v25  ;;  %1797 = vpow2.f32 %v1577_v26 }
 0x195   :  { %1799 = vrcp.f32 %v985_v46  ;;  %vm994_vm11 = vweird.f32 %v985_v46  ;;  %v998_v20 = vand.u32 2147483647, %v985_v46  ;;  %v1000_v27 = vand.u32 2147483648, %v985_v46 }
 0x196   :  { %1801 = vrcp.f32 %v986_v13  ;;  %vm1009_vm12 = vweird.f32 %v986_v13  ;;  %v1013_v21 = vand.u32 2147483647, %v986_v13  ;;  %v1015_v33 = vand.u32 2147483648, %v986_v13 }
 0x197   :  { %1803 = vpow2.f32 %v1578_v32  ;;  %vm999_vm0 = vcmp.eq.f32.partialorder %v998_v20, 8.507059e+37  ;;  %v1001_v15 = vor.u32 1.1754944e-38, %v1000_v27 }
 0x198   :  { %v1016_v49 = vor.u32 1.1754944e-38, %v1015_v33  ;;  %vm1014_vm6 = vcmp.eq.f32.partialorder %v1013_v21, 8.507059e+37 }
 0x19a   :  { %v1798_v55 = vpop.eup %1797 }
 0x19b   :  { %v1800_v7 = vpop.eup %1799  ;;  %v987_v22 = vadd.f32 1.0, %v1798_v55 }
 0x19c   :  { %v1802_v35 = vpop.eup %1801  ;;  %v990_v17 = vmul.f32 %v1800_v7, %v985_v46  ;;  %vm995_vm10 = vweird.f32 %v1800_v7 }
 0x19d   :  { %v1804_v0 = vpop.eup %1803  ;;  %v1005_v8 = vmul.f32 %v1802_v35, %v986_v13  ;;  %1805 = vrcp.f32 %v987_v22  ;;  %v1030_v29 = vand.u32 2147483648, %v987_v22  ;;  %vm2366_vm13 = vmor %vm994_vm11, %vm995_vm10  ;;  %vm1010_vm14 = vweird.f32 %v1802_v35 }
 0x19e   :  { %v991_v47 = vsub.f32 1.0, %v990_v17  ;;  %v988_v5 = vadd.f32 1.0, %v1804_v0  ;;  %v1028_v50 = vand.u32 2147483647, %v987_v22  ;;  %vm1024_vm1 = vweird.f32 %v987_v22  ;;  %vm2373_vm2 = vmor %vm1009_vm12, %vm1010_vm14 }
 0x19f   :  { %v1006_v9 = vsub.f32 1.0, %v1005_v8  ;;  %v1031_v42 = vor.u32 1.1754944e-38, %v1030_v29 }
 0x1a0   :  { %v992_v52 = vmul.f32 %v1800_v7, %v991_v47  ;;  %1807 = vrcp.f32 %v988_v5  ;;  %v1043_v43 = vand.u32 2147483647, %v988_v5  ;;  %v1045_v48 = vand.u32 2147483648, %v988_v5 }
 0x1a1   :  { %v1007_v16 = vmul.f32 %v1802_v35, %v1006_v9  ;;  %vm1029_vm5 = vcmp.eq.f32.partialorder %v1028_v50, 8.507059e+37  ;;  %vm1039_vm7 = vweird.f32 %v988_v5 }
 0x1a2   :  { %v993_v53 = vadd.f32 %v1800_v7, %v992_v52  ;;  %v1046_v24 = vor.u32 1.1754944e-38, %v1045_v48  ;;  %vm1044_vm9 = vcmp.eq.f32.partialorder %v1043_v43, 8.507059e+37 }
 0x1a3   :  { %v1806_v11 = vpop.eup %1805  ;;  %v1008_v37 = vadd.f32 %v1802_v35, %v1007_v16 }
 0x1a4   :  { %v1020_v6 = vmul.f32 %v1806_v11, %v987_v22  ;;  %v997_v23 = vsel %vm2366_vm13, %v1800_v7, %v993_v53  ;;  %vm1025_vm15 = vweird.f32 %v1806_v11 }
 0x1a5   :  { %v1002_v34 = vsel %vm999_vm0, %v1001_v15, %v997_v23  ;;  %v1012_v44 = vsel %vm2373_vm2, %v1802_v35, %v1008_v37  ;;  %vm1026_vm3 = vmor %vm1024_vm1, %vm1025_vm15 }
 0x1a6   :  { %v1808_v61 = vpop.eup %1807  ;;  %v1021_v28 = vsub.f32 1.0, %v1020_v6  ;;  %v1049_v2 = vmul.f32 %v1002_v34, %v2348_v12  ;;  %v1017_v57 = vsel %vm1014_vm6, %v1016_v49, %v1012_v44  ;;  %v1087_v12 = vld [vmem:[%s2421_s6] sm:$0x3]  ;;  %s1965_s6 = smov [#allocation8]  }
 0x1a7   :  { %v1035_v63 = vmul.f32 %v1808_v61, %v988_v5  ;;  %vm1040_vm4 = vweird.f32 %v1808_v61  ;;  %v1050_v18 = vmul.f32 %v1017_v57, %v2352_v10  ;;  %v1090_v46 = vperm.slane %v1087_v12, 1  ;;  %s1401_s26 = sshll.u32 %s1965_s6, 4  ;;  %s1402_s26 = int_to_ptr.vmem [resolvable:$true] %s1401_s26 }
 0x1a8   :  { %v1022_v1 = vmul.f32 %v1806_v11, %v1021_v28  ;;  %vm1041_vm8 = vmor %vm1039_vm7, %vm1040_vm4 }
 0x1a9   :  { %v1036_v14 = vsub.f32 1.0, %v1035_v63 }
 0x1aa   :  { %v1023_v40 = vadd.f32 %v1806_v11, %v1022_v1 }
 0x1ab   :  { %v1037_v45 = vmul.f32 %v1808_v61, %v1036_v14 }
 0x1ac   :  { %v1027_v60 = vsel %vm1026_vm3, %v1806_v11, %v1023_v40 }
 0x1ad   :  { %v1032_v31 = vsel %vm1029_vm5, %v1031_v42, %v1027_v60  ;;  %v1038_v54 = vadd.f32 %v1808_v61, %v1037_v45 }
 0x1ae   :  { %v1051_v58 = vmul.f32 %v1032_v31, %v2358_v56  ;;  %v1089_v56 = vperm.slane %v1087_v12, 0 }
 0x1af   :  { %v1042_v51 = vsel %vm1041_vm8, %v1808_v61, %v1038_v54 }
 0x1b0   :  { %v1047_v59 = vsel %vm1044_vm9, %v1046_v24, %v1042_v51  ;;  %v1053_v62 = vpack.c.bf16 %v1051_v58, %v1049_v2 }
 0x1b1   :  { %v1052_v26 = vmul.f32 %v1047_v59, %v2362_v36 }
 0x1b2   :  { %1261 = vmatmul.bf16.vlgmr.msrb.gmra.mxu0 %v1053_v62  ;;  %1289 = vmatmul.bf16.vlgmr.msrb.gmra.mxu2 %v1053_v62 }
 0x1b3   :  { %v1054_v41 = vpack.c.bf16 %v1052_v26, %v1050_v18 }
 0x1b5   :  { %1275 = vmatmul.bf16.vlgmr.msrb.gmra.mxu1 %v1054_v41  ;;  %1303 = vmatmul.bf16.vlgmr.msrb.gmra.mxu3 %v1054_v41 }
 0x22f   :  { %v1262_v19 = vpop.f32.mrf.mxu0 }
 0x230   :  { %v1263_v3 = vadd.f32 %v1262_v19, %v1089_v56 }
 0x232   :  { %v1276_v25 = vpop.f32.mrf.mxu1 }
 0x233   :  { %v2386_v32 = vadd.f32 %v1276_v25, %v1263_v3 }
 0x235   :  { %1309 = vst [vmem:[#allocation8] sm:$0xff] %v2386_v32  ;;  %v1707_v10 = vmul.f32 -1.442695, %v2386_v32  ;;  %v1290_v36 = vpop.f32.mrf.mxu2 }
 0x236   :  { %v1291_v39 = vadd.f32 %v1290_v36, %v1090_v46 }
 0x237   :  { %1809 = vpow2.f32 %v1707_v10  ;;  %v1264_v13 = vpop.f32.mrf.mxu0 }
 0x238   :  { %v1304_v4 = vpop.f32.mrf.mxu3  ;;  %v1265_v55 = vadd.f32 %v1264_v13, %v1089_v56 }
 0x239   :  { %v2390_v7 = vadd.f32 %v1304_v4, %v1291_v39 }
 0x23a   :  { %v1278_v22 = vpop.f32.mrf.mxu1 }
 0x23b   :  { %1310 = vst [vmem:[#allocation8 + $0x8] sm:$0xff] %v2390_v7  ;;  %v1708_v35 = vmul.f32 -1.442695, %v2390_v7  ;;  %v2394_v17 = vadd.f32 %v1278_v22, %v1265_v55 }
 0x23d   :  { %v1810_v0 = vpop.eup %1809  ;;  %1811 = vpow2.f32 %v1708_v35  ;;  %1311 = vst [vmem:[#allocation8 + $0x10] sm:$0xff] %v2394_v17  ;;  %v1709_v8 = vmul.f32 -1.442695, %v2394_v17  ;;  %v1292_v47 = vpop.f32.mrf.mxu2 }
 0x23e   :  { %v1325_v5 = vadd.f32 1.0, %v1810_v0  ;;  %v1293_v9 = vadd.f32 %v1292_v47, %v1090_v46 }
 0x23f   :  { %1813 = vpow2.f32 %v1709_v8 }
 0x240   :  { %1815 = vrcp.f32 %v1325_v5  ;;  %v1306_v52 = vpop.f32.mrf.mxu3  ;;  %v1340_v1 = vand.u32 2147483648, %v1325_v5  ;;  %vm1334_vm11 = vweird.f32 %v1325_v5  ;;  %v1338_v15 = vand.u32 2147483647, %v1325_v5 }
 0x241   :  { %v2401_v11 = vadd.f32 %v1306_v52, %v1293_v9 }
 0x242   :  { %v1341_v34 = vor.u32 1.1754944e-38, %v1340_v1  ;;  %vm1339_vm14 = vcmp.eq.f32.partialorder %v1338_v15, 8.507059e+37 }
 0x243   :  { %v1812_v16 = vpop.eup %1811  ;;  %1312 = vst [vmem:[#allocation8 + $0x18] sm:$0xff] %v2401_v11  ;;  %v1710_v53 = vmul.f32 -1.442695, %v2401_v11 }
 0x244   :  { %v1326_v6 = vadd.f32 1.0, %v1812_v16  ;;  %1409 = dma.vmem_to_hbm [thread:$0]  %s1402_s26, 512, %s1404_s29, [#allocation4], %s1966_s30, %s1966_s30, %s1967_s9  }
 0x245   :  { %v1814_v20 = vpop.eup %1813  ;;  %1817 = vpow2.f32 %v1710_v53 }
 0x246   :  { %v1816_v27 = vpop.eup %1815  ;;  %1819 = vrcp.f32 %v1326_v6  ;;  %v1327_v21 = vadd.f32 1.0, %v1814_v20  ;;  %v1355_v38 = vand.u32 2147483648, %v1326_v6  ;;  %v1353_v48 = vand.u32 2147483647, %v1326_v6 }
 0x247   :  { %v1330_v61 = vmul.f32 %v1816_v27, %v1325_v5  ;;  %vm1335_vm10 = vweird.f32 %v1816_v27  ;;  %vm1349_vm15 = vweird.f32 %v1326_v6 }
 0x248   :  { %1821 = vrcp.f32 %v1327_v21  ;;  %vm1336_vm12 = vmor %vm1334_vm11, %vm1335_vm10  ;;  %v1356_v31 = vor.u32 1.1754944e-38, %v1355_v38  ;;  %vm1354_vm1 = vcmp.eq.f32.partialorder %v1353_v48, 8.507059e+37  ;;  %vm1364_vm3 = vweird.f32 %v1327_v21 }
 0x249   :  { %v1331_v28 = vsub.f32 1.0, %v1330_v61  ;;  %v1370_v51 = vand.u32 2147483648, %v1327_v21  ;;  %v1368_v18 = vand.u32 2147483647, %v1327_v21 }
 0x24b   :  { %v1818_v29 = vpop.eup %1817  ;;  %v1332_v30 = vmul.f32 %v1816_v27, %v1331_v28  ;;  %v1371_v25 = vor.u32 1.1754944e-38, %v1370_v51  ;;  %vm1369_vm6 = vcmp.eq.f32.partialorder %v1368_v18, 8.507059e+37 }
 0x24c   :  { %v1820_v37 = vpop.eup %1819  ;;  %v1328_v33 = vadd.f32 1.0, %v1818_v29 }
 0x24d   :  { %v1333_v63 = vadd.f32 %v1816_v27, %v1332_v30  ;;  %v1345_v23 = vmul.f32 %v1820_v37, %v1326_v6  ;;  %vm1350_vm13 = vweird.f32 %v1820_v37 }
 0x24e   :  { %1823 = vrcp.f32 %v1328_v33  ;;  %v1822_v50 = vpop.eup %1821  ;;  %vm1351_vm0 = vmor %vm1349_vm15, %vm1350_vm13  ;;  %v1383_v41 = vand.u32 2147483647, %v1328_v33  ;;  %v1385_v12 = vand.u32 2147483648, %v1328_v33  ;;  %vm1379_vm7 = vweird.f32 %v1328_v33 }
 0x24f   :  { %v1346_v14 = vsub.f32 1.0, %v1345_v23  ;;  %v1360_v40 = vmul.f32 %v1822_v50, %v1327_v21  ;;  %v1337_v42 = vsel %vm1336_vm12, %v1816_v27, %v1333_v63  ;;  %vm1365_vm2 = vweird.f32 %v1822_v50 }
 0x250   :  { %v1342_v60 = vsel %vm1339_vm14, %v1341_v34, %v1337_v42  ;;  %vm1366_vm4 = vmor %vm1364_vm3, %vm1365_vm2  ;;  %v1386_v36 = vor.u32 1.1754944e-38, %v1385_v12  ;;  %vm1384_vm9 = vcmp.eq.f32.partialorder %v1383_v41, 8.507059e+37 }
 0x251   :  { %v1347_v43 = vmul.f32 %v1820_v37, %v1346_v14  ;;  %v1361_v44 = vsub.f32 1.0, %v1360_v40  ;;  %v1389_v59 = vmul.f32 %v1342_v60, %v2386_v32 }
 0x253   :  { %v1348_v45 = vadd.f32 %v1820_v37, %v1347_v43  ;;  %v1362_v54 = vmul.f32 %v1822_v50, %v1361_v44 }
 0x254   :  { %v1824_v49 = vpop.eup %1823 }
 0x255   :  { %v1352_v2 = vsel %vm1351_vm0, %v1820_v37, %v1348_v45  ;;  %v1375_v57 = vmul.f32 %v1824_v49, %v1328_v33  ;;  %v1363_v24 = vadd.f32 %v1822_v50, %v1362_v54  ;;  %vm1380_vm5 = vweird.f32 %v1824_v49 }
 0x256   :  { %v1357_v58 = vsel %vm1354_vm1, %v1356_v31, %v1352_v2  ;;  %vm1381_vm8 = vmor %vm1379_vm7, %vm1380_vm5 }
 0x257   :  { %v1390_v62 = vmul.f32 %v1357_v58, %v2390_v7  ;;  %v1376_v26 = vsub.f32 1.0, %v1375_v57  ;;  %v1367_v19 = vsel %vm1366_vm4, %v1822_v50, %v1363_v24 }
 0x258   :  { %v1372_v10 = vsel %vm1369_vm6, %v1371_v25, %v1367_v19 }
 0x259   :  { %v1393_v56 = vpack.c.bf16 %v1390_v62, %v1389_v59  ;;  %v1377_v3 = vmul.f32 %v1824_v49, %v1376_v26  ;;  %v1391_v13 = vmul.f32 %v1372_v10, %v2394_v17 }
 0x25b   :  { %1395 = vst [vmem:[#allocation9] sm:$0xff] %v1393_v56  ;;  %v1378_v46 = vadd.f32 %v1824_v49, %v1377_v3 }
 0x25d   :  { %v1382_v32 = vsel %vm1381_vm8, %v1824_v49, %v1378_v46 }
 0x25e   :  { %v1387_v39 = vsel %vm1384_vm9, %v1386_v36, %v1382_v32 }
 0x25f   :  { %v1392_v4 = vmul.f32 %v1387_v39, %v2401_v11 }
 0x261   :  { %v1394_v55 = vpack.c.bf16 %v1392_v4, %v1391_v13 }
 0x263   :  { %1396 = vst [vmem:[#allocation9 + $0x8] sm:$0xff] %v1394_v55 }
 0x264   :  { %1422 = dma.vmem_to_hbm [thread:$0]  %s1415_s10, 256, %s1417_s15, [#allocation10], %s1954_s13, %s1954_s13, %s1955_s14  }
 0x265   :  { %1949 = dma.done.wait [#allocation4], 512  }
 0x266   :  { %1950 = vsyncadd [#allocation4], 4294966784 }
 0x267   :  { %1951 = dma.done.wait [#allocation10], 256  }
 0x268   :  { %1952 = vsyncadd [#allocation10], 4294967040 }
 0x269   :  { %1431 = vsyncpa [#allocation3], 1 }
 0x26a   :  { %1432 = vsyncpa [#allocation6], 1 }
 0x26b   :  { %1433 = vsyncpa [#allocation4], 1 }
 0x26c   :  { %1434 = vsyncpa [#allocation10], 1 }

</bundles_post_ra>
